<compile_context>
chip_gen: v6e
topology: v6e:2x2x1
jax: 0.10.0
libtpu: 0.0.40
codegen_flags: <defaults>
</compile_context>

<pallas_src>
import jax
import jax.numpy as jnp
from jax.experimental import pallas as pl
from jax.experimental.pallas import tpu as pltpu


_LANE = 128


def _afm_kernel(x_ref, p_ref, o_ref):
    # x_ref: (tn, tc, thw)   p_ref: (tn, 1, thw)   o_ref: (tn, tc, thw)
    p = p_ref[...].astype(jnp.float32)
    t = jnp.abs(jnp.tanh(0.5 * p))            # = 2*|sigmoid(p) - 0.5|
    att_p1 = (t - 1.0) * (t - 1.0) + 1.0      # == 4d^2 - 4d + 2  (att + 1)
    # Single big multiply in x's native dtype; channel broadcast of the
    # (tn, 1, thw) attention tile happens in-vreg.
    o_ref[...] = x_ref[...] * att_p1.astype(x_ref.dtype)


def _target_block_bytes():
    """Per-generation x-block budget.  Double-buffered (x + out + pred) must
    stay under the scoped-VMEM default: ~16 MiB on v5e, ~32 MiB on v6e/v7x."""
    try:
        kind = jax.devices()[0].device_kind.lower()
    except Exception:
        return 2 * 1024 * 1024
    if "v5" in kind:
        return 2 * 1024 * 1024     # 2*(2 + 2) MiB + eps  ~  8.5 MiB  < 16 MiB
    return 4 * 1024 * 1024         # 2*(4 + 4) MiB + eps  ~ 16.5 MiB  < 32 MiB


def _pick_hw_tile(hw, cap):
    """Full extent if it fits; otherwise the largest multiple of 128 <= cap,
    preferring one that divides HW exactly (no ragged remainder tile)."""
    if hw <= cap:
        return hw
    cap = max((cap // _LANE) * _LANE, _LANE)
    t = cap
    while t >= _LANE:
        if hw % t == 0:
            return t
        t -= _LANE
    return cap


def afm_forward(x, pred):
    """x: (N, C, H, W), pred: (N, 1, H, W)  ->  (N, C, H, W) = x*att + x."""
    N, C, H, W = x.shape
    assert pred.shape == (N, 1, H, W), "pred expected as (N, 1, H, W)"
    HW = H * W

    x2 = x.reshape(N, C, HW)
    p2 = pred.reshape(N, 1, HW)

    itemsize = jnp.dtype(x.dtype).itemsize
    # Sublane alignment is dtype-aware: 8 (f32), 16 (bf16), 32 (int8/fp8).
    sub = max(8, 32 // itemsize)
    target_elems = _target_block_bytes() // itemsize

    # Lane tile first (lane-dense output is the biggest lever), then channels,
    # then pack batch items so small feature maps still get ~MiB-sized DMAs.
    thw = _pick_hw_tile(HW, min(8192, target_elems))
    tc_cap = max(sub, (target_elems // max(thw, 1)) // sub * sub)
    tc = C if C <= tc_cap else tc_cap
    if tc == C:
        tn = max(1, min(N, target_elems // max(tc * thw, 1)))
    else:
        tn = 1

    grid = (pl.cdiv(N, tn), pl.cdiv(C, tc), pl.cdiv(HW, thw))

    # v7x has 2 TensorCores per chip: guarantee >= 2 grid steps for tiny
    # problems so both cores get work (irrelevant but harmless on v5e/v6e).
    if grid[0] * grid[1] * grid[2] == 1:
        if tn >= 2:
            tn = pl.cdiv(tn, 2)
        elif thw >= 2 * _LANE and (thw // 2) % _LANE == 0:
            thw = thw // 2
        elif tc >= 2 * sub:
            tc = (tc // 2) // sub * sub
        grid = (pl.cdiv(N, tn), pl.cdiv(C, tc), pl.cdiv(HW, thw))

    n_c_tiles = pl.cdiv(C, tc)
    cost = pl.CostEstimate(
        flops=N * C * HW + 4 * N * HW * n_c_tiles,      # big mul + att poly per C tile
        transcendentals=N * HW * n_c_tiles,             # tanh recomputed per C tile
        bytes_accessed=(2 * N * C * HW + N * HW * n_c_tiles) * itemsize,
    )

    out = pl.pallas_call(
        _afm_kernel,
        out_shape=jax.ShapeDtypeStruct((N, C, HW), x.dtype),
        grid=grid,
        in_specs=[
            pl.BlockSpec((tn, tc, thw), lambda n, c, h: (n, c, h)),
            pl.BlockSpec((tn, 1, thw), lambda n, c, h: (n, 0, h)),
        ],
        out_specs=pl.BlockSpec((tn, tc, thw), lambda n, c, h: (n, c, h)),
        compiler_params=pltpu.CompilerParams(
            dimension_semantics=("parallel", "parallel", "parallel"),
        ),
        cost_estimate=cost,
    )(x2, p2)

    return out.reshape(N, C, H, W)


def _afm_reference(x, pred):
    score = jax.nn.sigmoid(pred)
    dist = jnp.abs(score - 0.5)
    att = 4.0 * dist**2 - 4.0 * dist + 1.0
    return x * att + x


if __name__ == "__main__":
    key = jax.random.PRNGKey(0)
    kx, kp = jax.random.split(key)

    # Primary (f32) test at the module's natural small shape.
    N, C, H, W = 2, 4, 16, 16
    x = jax.random.normal(kx, (N, C, H, W), dtype=jnp.float32)
    pred = jax.random.normal(kp, (N, 1, H, W), dtype=jnp.float32)

    out = jax.block_until_ready(afm_forward(x, pred))
    ref = _afm_reference(x, pred)
    assert out.shape == (N, C, H, W)
    assert jnp.allclose(out, ref, atol=1e-5, rtol=1e-5), "f32 mismatch vs reference"

    # bf16 path (native-dtype multiply) with tolerance appropriate for bf16.
    xb = x.astype(jnp.bfloat16)
    pb = pred.astype(jnp.bfloat16)
    outb = jax.block_until_ready(afm_forward(xb, pb))
    refb = _afm_reference(xb.astype(jnp.float32), pb.astype(jnp.float32))
    assert jnp.allclose(outb.astype(jnp.float32), refb, atol=5e-2, rtol=2e-2), \
        "bf16 mismatch vs reference"

    print("KERNEL_OK")
</pallas_src>

<mosaic_0001>
module attributes {stable_mosaic.version = 11 : i64} {
  func.func @_afm_kernel(%arg0: i32, %arg1: i32, %arg2: i32, %arg3: memref<1x4x256xf32, #tpu.memory_space<vmem>>, %arg4: memref<1x1x256xf32, #tpu.memory_space<vmem>>, %arg5: memref<1x4x256xf32, #tpu.memory_space<vmem>>) attributes {dimension_semantics = [#tpu.dimension_semantics<parallel>, #tpu.dimension_semantics<parallel>, #tpu.dimension_semantics<parallel>], iteration_bounds = array<i64: 2, 1, 1>, scalar_prefetch = 0 : i64, scratch_operands = 0 : i64, tpu.core_type = #tpu.core_type<tc>, window_params = [{transform_indices = @transform_0, window_bounds = array<i64: 1, 4, 256>}, {transform_indices = @transform_1, window_bounds = array<i64: 1, 1, 256>}, {transform_indices = @transform_2, window_bounds = array<i64: 1, 4, 256>}]} {
    %c0 = arith.constant 0 : index
    %c0_0 = arith.constant 0 : index
    %c0_1 = arith.constant 0 : index
    %0 = vector.load %arg4[%c0, %c0_0, %c0_1] : memref<1x1x256xf32, #tpu.memory_space<vmem>>, vector<1x1x256xf32>
    %cst = arith.constant 5.000000e-01 : f32
    %1 = vector.broadcast %cst : f32 to vector<1x1x256xf32>
    %2 = arith.mulf %1, %0 : vector<1x1x256xf32>
    %3 = math.tanh %2 : vector<1x1x256xf32>
    %4 = math.absf %3 : vector<1x1x256xf32>
    %cst_2 = arith.constant 1.000000e+00 : f32
    %5 = vector.broadcast %cst_2 : f32 to vector<1x1x256xf32>
    %6 = arith.subf %4, %5 : vector<1x1x256xf32>
    %cst_3 = arith.constant 1.000000e+00 : f32
    %7 = vector.broadcast %cst_3 : f32 to vector<1x1x256xf32>
    %8 = arith.subf %4, %7 : vector<1x1x256xf32>
    %9 = arith.mulf %6, %8 : vector<1x1x256xf32>
    %cst_4 = arith.constant 1.000000e+00 : f32
    %10 = vector.broadcast %cst_4 : f32 to vector<1x1x256xf32>
    %11 = arith.addf %9, %10 : vector<1x1x256xf32>
    %c0_5 = arith.constant 0 : index
    %c0_6 = arith.constant 0 : index
    %c0_7 = arith.constant 0 : index
    %12 = vector.load %arg3[%c0_5, %c0_6, %c0_7] : memref<1x4x256xf32, #tpu.memory_space<vmem>>, vector<1x4x256xf32>
    %13 = vector.broadcast %11 : vector<1x1x256xf32> to vector<1x4x256xf32>
    %14 = arith.mulf %12, %13 : vector<1x4x256xf32>
    %c0_8 = arith.constant 0 : index
    %c0_9 = arith.constant 0 : index
    %c0_10 = arith.constant 0 : index
    %15 = vector.load %arg5[%c0_8, %c0_9, %c0_10] : memref<1x4x256xf32, #tpu.memory_space<vmem>>, vector<1x4x256xf32>
    tpu.vector_store %arg5[%c0_8, %c0_9, %c0_10], %14 {strides = array<i32>} : memref<1x4x256xf32, #tpu.memory_space<vmem>>, vector<1x4x256xf32>,
    return
  }
  func.func @transform_0(%arg0: i32, %arg1: i32, %arg2: i32) -> (i32, i32, i32) {
    %c0_i32 = arith.constant 0 : i32
    return %arg0, %arg1, %arg2 : i32, i32, i32
  }
  func.func @transform_1(%arg0: i32, %arg1: i32, %arg2: i32) -> (i32, i32, i32) {
    %c0_i32 = arith.constant 0 : i32
    %c0_i32_0 = arith.constant 0 : i32
    return %arg0, %c0_i32, %arg2 : i32, i32, i32
  }
  func.func @transform_2(%arg0: i32, %arg1: i32, %arg2: i32) -> (i32, i32, i32) {
    %c0_i32 = arith.constant 0 : i32
    return %arg0, %arg1, %arg2 : i32, i32, i32
  }
}

</mosaic_0001>

<bundles_post_ra>
// kernel: tpu_custom_call.1
= control target key start
LH: loop header
LB: loop body
LE: loop exit
PB: predicated region body
PF: predicated region fallthrough
CT: control target
= control target key end

     0   :  { %7 = vsyncpa [#allocation3], 0  ;;  %s809_s0 = inlined_call_operand.hbm [shape: f32[2,4,256], index: 0, kind: input, shape index: {}]   ;;  %s810_s1 = inlined_call_operand.hbm [shape: f32[2,1,256], index: 1, kind: input, shape index: {}]   ;;  %s811_s2 = inlined_call_operand.hbm [shape: f32[2,4,256], index: 2, kind: output, shape index: {}]  }
   0x1   :  { %9 = vsyncpa [#allocation3 + $0x1], 0 }
   0x2   :  { %10 = vsyncpa [#allocation6], 0 }
   0x3   :  { %12 = vsyncpa [#allocation6 + $0x1], 0 }
   0x4   :  { %13 = vsyncpa [#allocation4], 0 }
   0x5   :  { %15 = vsyncpa [#allocation4 + $0x1], 0  ;;  %s645_s9 = smov 0   ;;  %s647_s10 = smov 0  }
   0x6   :  { %s649_s11 = smov 0   ;;  %s651_s12 = smov 0  }
   0x7   :  { %s653_s13 = smov 0   ;;  %s655_s14 = smov 0  }
   0x8 LB: > { %s393_s15 = sadd.s32 4294967295, %s625_s14   ;;  %s394_s16 = sadd.s32 4294967294, %s625_s14   ;;  %s625_s14 = sphi %s655_s14, %s21_s14   ;;  %s621_s13 = sphi %s653_s13, %s823_s13   ;;  %s617_s12 = sphi %s651_s12, %s822_s12   ;;  %s613_s11 = sphi %s649_s11, %s821_s11   ;;  %s609_s10 = sphi %s647_s10, %s820_s10   ;;  %s605_s9 = sphi %s645_s9, %s819_s9  }
   0x9   : > { %s40_s17 = sadd.s32 1, %s621_s13  ;;  %s51_s18 = sadd.s32 1, %s613_s11 }
   0xa   : > { %p42_p0 = scmp.ge.s32.totalorder %s40_s17, 2  ;;  %p58_p1 = scmp.ne.s32.totalorder %s613_s11, %s609_s10 }
   0xb   : > { %p59_p2 = scmp.eq.s32.totalorder %s625_s14, 0  ;;  %p64_p3 = scmp.ne.s32.totalorder %s609_s10, %s605_s9 }
   0xc   : > { %s825_s17 = smov (%p42_p0, %s40_s17), 0  ;;  %p65_p5 = scmp.eq.s32.totalorder %s393_s15, 0 }
   0xd   : > { %p686_p4 = por %p59_p2, %p58_p1  ;;  %s44_s20 = ssub.s32 %s621_s13, %s825_s17 }
   0xe   : > { %p120_p6 = scmp.eq.s32.totalorder %s393_s15, 1  ;;  %p49_p7 = scmp.eq.s32.totalorder %s44_s20, 0 }
   0xf   : > { %p692_p8 = por %p65_p5, %p64_p3  ;;  %p126_p10 = scmp.eq.s32.totalorder %s394_s16, 1 }
  0x10   : > { %p696_p9 = por %p120_p6, %p58_p1  ;;  %p433_p13 = scmp.lt.s32.totalorder %s625_s14, 2 }
  0x11   : > { %s701_s23 = scalar_select %p49_p7, %s613_s11, %s51_s18  }
  0x12   : > { %p703_p11 = por %p126_p10, %p64_p3  ;;  %s710_s25 = sand.u32 1, %s613_s11  }
  0x13   : > { %s397_s26 = sshll.u32 %s710_s25, 3  ;;  %s413_s27 = sshll.u32 %s621_s13, 7 }
  0x14   : > { %s160_s30 = scalar_lea.hbm %s809_s0, %s413_s27  ;;  %s150_s3 = scalar_lea.vmem [#allocation2], %s397_s26 }
  0x15   : > { %s162_s4 = sshll.u32 %s150_s3, 4  ;;  %p719_p0 = pnand %p433_p13, %p686_p4  ;;  %s163_s4 = int_to_ptr.vmem [resolvable:$true] %s162_s4 }
  0x16   : > { %p403_p1 = scmp.ge.s32.totalorder %s625_s14, 1  ;;  %p188_p2 = scmp.lt.s32.totalorder %s625_s14, 3 }
  0x17   : > { %s147_s6 = scalar_lea.sflag [#allocation3], %s710_s25  ;;  %p487_p3 = pneg %p719_p0 }
  0x18   : > { %s498_s7 = scalar_lea.vmem %s163_s4, 128  ;;  %s627_s8 = smov [#allocation2]  }
  0x19   : > { %p499_p5 = scmp.ne.s32.totalorder %s163_s4, %s498_s7  ;;  %s503_s15 = sshll.u32 %s627_s8, 4  ;;  %s504_s15 = int_to_ptr.vmem [resolvable:$false] %s503_s15 }
  0x1a   : > { %s505_s16 = scalar_lea.vmem %s504_s15, 256  ;;  %p506_p4 = scmp.lt.s32.totalorder %s163_s4, %s504_s15 }
  0x1b   : > { %p501_p6 = pnand %p499_p5, %p487_p3  ;;  %p507_p10 = scmp.lt.s32.totalorder %s505_s16, %s498_s7 }
  0x1d   : > { %p502_p7 = pneg %p501_p6  ;;  %p508_p13 = por %p507_p10, %p506_p4 }
  0x1f   : > { %p509_p12 = pnand %p508_p13, %p502_p7 }
  0x21   : > { %512 = shalt.err (!%p509_p12)
}
  0x22   : > { %425 = dma.hbm_to_vmem [thread:$0]  (!%p719_p0), %s160_s30, 128, %s163_s4, %s147_s6  }
  0x23   : > { %p737_p5 = pnand %p403_p1, %p188_p2  ;;  %s400_s19 = sshll.u32 %s710_s25, 1 }
  0x24   : > { %s414_s20 = sshll.u32 %s621_s13, 5  ;;  %s173_s29 = scalar_lea.vmem [#allocation5], %s400_s19 }
  0x25   : > { %s181_s28 = scalar_lea.hbm %s810_s1, %s414_s20  ;;  %s183_s3 = sshll.u32 %s173_s29, 4  ;;  %s184_s3 = int_to_ptr.vmem [resolvable:$true] %s183_s3 }
  0x26   : > { %s170_s7 = scalar_lea.sflag [#allocation6], %s710_s25  ;;  %s526_s8 = scalar_lea.vmem %s184_s3, 32 }
  0x27   : > { %p527_p12 = scmp.ne.s32.totalorder %s184_s3, %s526_s8  ;;  %s628_s30 = smov [#allocation5]  }
  0x28   : > { %s531_s4 = sshll.u32 %s628_s30, 4  ;;  %s532_s4 = int_to_ptr.vmem [resolvable:$false] %s531_s4 }
  0x29   : > { %p529_p6 = pnand %p527_p12, %p487_p3  ;;  %s533_s6 = scalar_lea.vmem %s532_s4, 64 }
  0x2a   : > { %p534_p1 = scmp.lt.s32.totalorder %s184_s3, %s532_s4  ;;  %p535_p2 = scmp.lt.s32.totalorder %s533_s6, %s526_s8 }
  0x2b   : > { %p530_p7 = pneg %p529_p6 }
  0x2c   : > { %p536_p4 = por %p535_p2, %p534_p1 }
  0x2e   : > { %p537_p10 = pnand %p536_p4, %p530_p7 }
  0x30   : > { %540 = shalt.err (!%p537_p10)
}
  0x31   : > { %428 = dma.hbm_to_vmem [thread:$0]  (!%p719_p0), %s181_s28, 32, %s184_s3, %s170_s7  }
  0x32   : > { %192 = sbr.rel (%p737_p5) target bundleno = 103 (0x67), region = 28  ;;  %s755_s25 = sand.u32 (!%p737_p5), 1, %s609_s10  }
  0x33   : > { %s404_s15 = sshll.u32 (!%p737_p5), %s755_s25, 3  ;;  %s195_s16 = scalar_lea.sflag (!%p737_p5), [#allocation3], %s755_s25 }
  0x34   : > { %s198_s19 = scalar_lea.vmem (!%p737_p5), [#allocation2], %s404_s15 }
  0x37   : > { %592 = dma.done.wait (%p692_p8), %s195_s16, 128  }
  0x38   : > { %594 = vsyncadd (%p692_p8), %s195_s16, 4294967168  ;;  %s405_s5 = sshll.u32 %s755_s25, 1  ;;  %s204_s18 = scalar_lea.sflag [#allocation6], %s755_s25 }
  0x39   : > { %s207_s20 = scalar_lea.vmem [#allocation5], %s405_s5 }
  0x3a   : > { %596 = dma.done.wait (%p692_p8), %s204_s18, 32  }
  0x3b   : > { %598 = vsyncadd (%p692_p8), %s204_s18, 4294967264  ;;  %v236_v0 = vld [vmem:[%s207_s20] sm:$0x3]  ;;  %v245_v2 = vlaneseq  ;;  %v243_v13 = vld [vmem:[%s198_s19] sm:$0xff]  ;;  %s232_s21 = scalar_lea.vmem [#allocation7], %s404_s15  ;;  %s415_s27 = sshll.u32 %s617_s12, 7 }
  0x3c   : > { %v237_v1 = vmul.f32 0.5, %v236_v0  ;;  %s276_s26 = sshll.u32 %s232_s21, 4  ;;  %s274_s3 = scalar_lea.hbm %s811_s2, %s415_s27  ;;  %s277_s26 = int_to_ptr.vmem [resolvable:$true] %s276_s26 }
  0x3d   : > { %v246_v5 = vshrl.u32 %v245_v2, 7  ;;  %s258_s7 = scalar_lea.sflag [#allocation4], %s755_s25  ;;  %s541_s8 = scalar_lea.vmem %s277_s26, 128 }
  0x3e   : > { %483 = vtanh.f32 %v237_v1  ;;  %p542_p8 = scmp.ne.s32.totalorder %s277_s26, %s541_s8  ;;  %s629_s30 = smov [#allocation7]  }
  0x3f   : > { %v247_v8 = vsub.s32 0, %v246_v5  ;;  %v251_v9 = vsub.s32 1, %v246_v5  ;;  %s545_s4 = sshll.u32 %s629_s30, 4  ;;  %s546_s4 = int_to_ptr.vmem [resolvable:$false] %s545_s4 }
  0x40   : > { %p543_p0 = pnand %p542_p8, %p696_p9  ;;  %s547_s6 = scalar_lea.vmem %s546_s4, 256 }
  0x41   : > { %p548_p13 = scmp.lt.s32.totalorder %s277_s26, %s546_s4  ;;  %p549_p5 = scmp.lt.s32.totalorder %s547_s6, %s541_s8 }
  0x42   : > { %p544_p3 = pneg %p543_p0 }
  0x43   : > { %p550_p12 = por %p549_p5, %p548_p13 }
  0x45   : > { %p551_p6 = pnand %p550_p12, %p544_p3 }
  0x4b   : > { %v484_v3 = vpop.eup %483 }
  0x4c   : > { %v239_v4 = vand.u32 2147483647, %v484_v3 }
  0x4e   : > { %v407_v6 = vadd.f32 -1.0, %v239_v4 }
  0x50   : > { %v241_v7 = vmul.f32 %v407_v6, %v407_v6 }
  0x52   : > { %v242_v10 = vadd.f32 1.0, %v241_v7 }
  0x54   : > { %v248_v11 = vrot.slane %v242_v10, %v247_v8  ;;  %v252_v12 = vrot.slane %v242_v10, %v251_v9 }
  0x56   : > { %v253_v14 = vcombine.low %v248_v11, %v252_v12 }
  0x58   : > { %v255_v15 = vmul.f32 %v253_v14, %v243_v13 }
  0x5a   : > { %256 = vst [vmem:[%s232_s21] sm:$0xff] %v255_v15 }
  0x5b   : > { %554 = shalt.err (!%p551_p6)
}
  0x5c   : > { %s555_s12 = scalar_lea.hbm %s274_s3, 128  ;;  %s559_s16 = scalar_lea.hbm %s811_s2, 256 }
  0x5d   : > { %p556_p7 = scmp.ne.s32.totalorder %s274_s3, %s555_s12  ;;  %p560_p4 = scmp.lt.s32.totalorder %s274_s3, %s811_s2 }
  0x5e   : > { %p561_p10 = scmp.lt.s32.totalorder %s559_s16, %s555_s12 }
  0x5f   : > { %p557_p1 = pnand %p556_p7, %p696_p9 }
  0x60   : > { %p562_p8 = por %p561_p10, %p560_p4 }
  0x61   : > { %p558_p2 = pneg %p557_p1 }
  0x63   : > { %p563_p0 = pnand %p562_p8, %p558_p2 }
  0x65   : > { %566 = shalt.err (!%p563_p0)
}
  0x66   : > { %420 = dma.vmem_to_hbm [thread:$0]  (%p696_p9), %s277_s26, 128, %s274_s3, %s258_s7  }
  0x67 PF: > { %s288_s18 = sand.u32 1, %s605_s9   ;;  %p818_p3 = scmp.ge.s32.totalorder %s625_s14, 2 }
  0x68   : > { %s289_s20 = scalar_lea.sflag [#allocation4], %s288_s18 }
  0x69   : > { %p430_p13 = pnand %p818_p3, %p703_p11 }
  0x6b   : > { %p431_p5 = pneg %p430_p13 }
  0x6d   : > { %600 = dma.done.wait (%p431_p5), %s289_s20, 128  }
  0x6e   : > { %602 = vsyncadd (%p431_p5), %s289_s20, 4294967168  ;;  %s21_s14 = sadd.s32 1, %s625_s14   ;;  %s819_s9 = smov %s609_s10 }
  0x6f   : > { %p18_p12 = scmp.ge.s32.totalorder %s21_s14, 4   ;;  %s820_s10 = smov %s613_s11 }
  0x70   : > { %s821_s11 = smov %s701_s23  ;;  %s822_s12 = smov %s621_s13 }
  0x71   : > { %s823_s13 = smov %s825_s17  ;;  %20 = sbr.rel (!%p18_p12) target bundleno = 8 (0x8), region = 86 }
  0x76   :  { %294 = vsyncpa [#allocation3], 1 }
  0x77   :  { %296 = vsyncpa [#allocation3 + $0x1], 1 }
  0x78   :  { %297 = vsyncpa [#allocation6], 1 }
  0x79   :  { %299 = vsyncpa [#allocation6 + $0x1], 1 }
  0x7a   :  { %300 = vsyncpa [#allocation4], 1 }
  0x7b   :  { %302 = vsyncpa [#allocation4 + $0x1], 1 }

</bundles_post_ra>
